<compile_context>
chip_gen: v7x
topology: tpu7x:2x2x1
jax: 0.10.0
libtpu: 0.0.40
codegen_flags: <defaults>
</compile_context>

<pallas_src>
import functools

import numpy as np
import jax
import jax.numpy as jnp
from jax.experimental import pallas as pl
from jax.experimental.pallas import tpu as pltpu

KERNEL = 3
STRIDE = 2
PAD = 1


def _round_up(x, m):
    return (x + m - 1) // m * m


def _kernel(w_ref, b_ref, x1_ref, x2_ref, o_ref, *, L_in):
    # w_ref: (3,) SMEM, b_ref: (1,) SMEM.
    # x1_ref: (Lp, tn) VMEM,  x1_ref[j, n] = x1[n, j]
    # x2_ref / o_ref: (2, Lp, tn) VMEM, [p, j, n] = column 2j+p of batch row n.
    w0 = w_ref[0]
    w1 = w_ref[1]
    w2 = w_ref[2]
    b = b_ref[0]

    x = x1_ref[...]                      # (Lp, tn)
    Lp = x.shape[0]

    # xs[j] = x[j+1]: sublane rotate (XLU slot, free next to the VPU/EUP work).
    # The wrapped row (and padding rows) are zeroed; they only ever feed output
    # columns that get sliced away, but masking keeps the kernel correct for any
    # L_in / Lp combination.
    xs = pltpu.roll(x, shift=Lp - 1, axis=0)
    row = jax.lax.broadcasted_iota(jnp.int32, x.shape, 0)
    xs = jnp.where(row < L_in - 1, xs, jnp.zeros_like(xs))

    v_even = w1 * x + b
    v_odd = w2 * x + w0 * xs + b

    half = jnp.float32(0.5)
    s_even = half * jnp.tanh(half * v_even) + half   # exact sigmoid identity, one EUP op
    s_odd = half * jnp.tanh(half * v_odd) + half

    o_ref[0] = s_even - x2_ref[0]
    o_ref[1] = s_odd - x2_ref[1]


def conv_transpose_sigmoid_sub(x1, x2, weight, bias, *, tile_n=None):
    """x1: (N, L_in) f32, x2: (N, L_out) f32, weight: (3,) f32, bias: (1,) f32."""
    N, L_in = x1.shape
    L_out = (L_in - 1) * STRIDE - 2 * PAD + KERNEL   # = 2*L_in - 1
    assert x2.shape == (N, L_out)

    f32 = jnp.float32
    Lp = _round_up(L_in, 8)              # sublane-aligned input length

    if tile_n is None:
        n128 = _round_up(N, 128)
        # VMEM per grid step: (1 in + 2 in + 2 out) slabs of (Lp, tile_n) f32,
        # double-buffered by the pipeline -> 40 * Lp * tile_n bytes.  Keep well
        # under v5e's 16 MiB default scoped VMEM (also fine on v7x's 64 MiB part).
        cap = max(128, ((6 * 1024 * 1024) // (40 * Lp)) // 128 * 128)
        if n128 <= 128:
            tile_n = 128                  # whole problem is a few KB: 1-step grid is fine
        else:
            # Guarantee >=2 grid steps: DMA/compute overlap + v7x dual-TC split.
            half_n = max(128, _round_up((n128 + 1) // 2, 128))
            tile_n = min(n128, cap, half_n)
    N_pad = _round_up(N, tile_n)

    # Wrapper layout plumbing: ONE pad+transpose pass per operand.  The even/odd
    # de-interleave of x2 rides on the same transpose the lane-dense layout needs
    # anyway, so there are no extra HBM round trips.
    x1t = jnp.zeros((Lp, N_pad), f32).at[:L_in, :N].set(x1.astype(f32).T)
    x2p = jnp.zeros((N_pad, 2 * Lp), f32).at[:N, :L_out].set(x2.astype(f32))
    x2s = x2p.reshape(N_pad, Lp, 2).transpose(2, 1, 0)        # (2, Lp, N_pad)

    x1_spec = pl.BlockSpec((Lp, tile_n), lambda i: (0, i))
    x2_spec = pl.BlockSpec((2, Lp, tile_n), lambda i: (0, 0, i))

    out = pl.pallas_call(
        functools.partial(_kernel, L_in=L_in),
        out_shape=jax.ShapeDtypeStruct((2, Lp, N_pad), f32),
        grid=(N_pad // tile_n,),
        in_specs=[
            pl.BlockSpec(memory_space=pltpu.MemorySpace.SMEM),    # weight (3,)
            pl.BlockSpec(memory_space=pltpu.MemorySpace.SMEM),    # bias (1,)
            x1_spec,
            x2_spec,
        ],
        out_specs=pl.BlockSpec((2, Lp, tile_n), lambda i: (0, 0, i)),
        compiler_params=pltpu.CompilerParams(dimension_semantics=("parallel",)),
    )(weight.astype(f32).reshape(KERNEL), bias.astype(f32).reshape(1), x1t, x2s)

    # Interleave + transpose back to (N, L_out): a single fused XLA pass.
    out_nl = out.transpose(2, 1, 0).reshape(N_pad, 2 * Lp)
    return out_nl[:N, :L_out]


def _reference(x1, x2, weight, bias):
    """Pure-numpy reference of ConvTranspose1d(1,1,3,stride=2,pad=1) + sigmoid - x2."""
    x1 = np.asarray(x1)
    x2 = np.asarray(x2)
    w = np.asarray(weight)
    b = float(np.asarray(bias)[0])
    N, L_in = x1.shape
    L_out = (L_in - 1) * STRIDE - 2 * PAD + KERNEL
    out = np.full((N, L_out), b, dtype=np.float64)
    for i in range(L_in):
        for k in range(KERNEL):
            o = i * STRIDE - PAD + k
            if 0 <= o < L_out:
                out[:, o] += x1[:, i].astype(np.float64) * float(w[k])
    v2 = 1.0 / (1.0 + np.exp(-out))
    return (v2 - x2.astype(np.float64)).astype(np.float32)


if __name__ == "__main__":
    # Shapes matching the PyTorch spec: x1 = randn(100, 1, 10) -> (N=100, L_in=10), L_out=19.
    N, L_in = 100, 10
    L_out = (L_in - 1) * STRIDE - 2 * PAD + KERNEL  # 19

    key = jax.random.PRNGKey(0)
    k1, k2, k3, k4, k5, k6 = jax.random.split(key, 6)
    x1_3d = jax.random.normal(k1, (N, 1, L_in), dtype=jnp.float32)
    # The spec's x2 of length 10 would not broadcast against the length-19
    # conv-transpose output; x2 is given the output length so `v2 - x2` is defined.
    x2_3d = jax.random.normal(k2, (N, 1, L_out), dtype=jnp.float32)
    x1 = x1_3d[:, 0, :]
    x2 = x2_3d[:, 0, :]

    # Deterministic parameter init (ConvTranspose1d weight (1,1,3) squeezed to (3,)).
    fan_in = 1 * KERNEL
    bound = 1.0 / np.sqrt(fan_in)
    weight = jax.random.uniform(k3, (KERNEL,), jnp.float32, -bound, bound)
    bias = jax.random.uniform(k4, (1,), jnp.float32, -bound, bound)

    ref = _reference(x1, x2, weight, bias)
    out = jax.block_until_ready(conv_transpose_sigmoid_sub(x1, x2, weight, bias))
    np.testing.assert_allclose(np.asarray(out), ref, rtol=1e-3, atol=1e-4)

    # Larger batch: exercises a multi-step grid (pipelined DMA, v7x dual-TC split).
    N2 = 300
    x1b = jax.random.normal(k5, (N2, L_in), dtype=jnp.float32)
    x2b = jax.random.normal(k6, (N2, L_out), dtype=jnp.float32)
    refb = _reference(x1b, x2b, weight, bias)
    outb = jax.block_until_ready(conv_transpose_sigmoid_sub(x1b, x2b, weight, bias))
    np.testing.assert_allclose(np.asarray(outb), refb, rtol=1e-3, atol=1e-4)

    print("KERNEL_OK")
</pallas_src>

<mosaic_0001>
module attributes {stable_mosaic.version = 11 : i64} {
  func.func @_kernel(%arg0: i32, %arg1: memref<3xf32, #tpu.memory_space<smem>>, %arg2: memref<1xf32, #tpu.memory_space<smem>>, %arg3: memref<16x128xf32, #tpu.memory_space<vmem>>, %arg4: memref<2x16x128xf32, #tpu.memory_space<vmem>>, %arg5: memref<2x16x128xf32, #tpu.memory_space<vmem>>) attributes {dimension_semantics = [#tpu.dimension_semantics<parallel>], iteration_bounds = array<i64: 1>, scalar_prefetch = 0 : i64, scratch_operands = 0 : i64, tpu.core_type = #tpu.core_type<tc>, window_params = [{transform_indices = @transform_0, window_bounds = array<i64: 3>}, {transform_indices = @transform_1, window_bounds = array<i64: 1>}, {transform_indices = @transform_2, window_bounds = array<i64: 16, 128>}, {transform_indices = @transform_3, window_bounds = array<i64: 2, 16, 128>}, {transform_indices = @transform_4, window_bounds = array<i64: 2, 16, 128>}]} {
    %c0 = arith.constant 0 : index
    %0 = memref.load %arg1[%c0] : memref<3xf32, #tpu.memory_space<smem>>
    %c1 = arith.constant 1 : index
    %1 = memref.load %arg1[%c1] : memref<3xf32, #tpu.memory_space<smem>>
    %c2 = arith.constant 2 : index
    %2 = memref.load %arg1[%c2] : memref<3xf32, #tpu.memory_space<smem>>
    %c0_0 = arith.constant 0 : index
    %3 = memref.load %arg2[%c0_0] : memref<1xf32, #tpu.memory_space<smem>>
    %c0_1 = arith.constant 0 : index
    %c0_2 = arith.constant 0 : index
    %4 = vector.load %arg3[%c0_1, %c0_2] : memref<16x128xf32, #tpu.memory_space<vmem>>, vector<16x128xf32>
    %c15_i32 = arith.constant 15 : i32
    %5 = tpu.dynamic_rotate %4 by %c15_i32 dim 0 : vector<16x128xf32>, i32 -> vector<16x128xf32>
    %6 = tpu.iota {dimensions = array<i32: 0>} : vector<16x128xi32>
    %c9_i32 = arith.constant 9 : i32
    %7 = vector.broadcast %c9_i32 : i32 to vector<16x128xi32>
    %8 = arith.cmpi slt, %6, %7 : vector<16x128xi32>
    %cst = arith.constant 0.000000e+00 : f32
    %9 = vector.broadcast %cst : f32 to vector<16x128xf32>
    %10 = arith.select %8, %5, %9 : vector<16x128xi1>, vector<16x128xf32>
    %11 = vector.broadcast %1 : f32 to vector<16x128xf32>
    %12 = arith.mulf %11, %4 : vector<16x128xf32>
    %13 = vector.broadcast %3 : f32 to vector<16x128xf32>
    %14 = arith.addf %12, %13 : vector<16x128xf32>
    %15 = vector.broadcast %2 : f32 to vector<16x128xf32>
    %16 = arith.mulf %15, %4 : vector<16x128xf32>
    %17 = vector.broadcast %0 : f32 to vector<16x128xf32>
    %18 = arith.mulf %17, %10 : vector<16x128xf32>
    %19 = arith.addf %16, %18 : vector<16x128xf32>
    %20 = vector.broadcast %3 : f32 to vector<16x128xf32>
    %21 = arith.addf %19, %20 : vector<16x128xf32>
    %cst_3 = arith.constant 5.000000e-01 : f32
    %22 = vector.broadcast %cst_3 : f32 to vector<16x128xf32>
    %23 = arith.mulf %22, %14 : vector<16x128xf32>
    %24 = math.tanh %23 : vector<16x128xf32>
    %cst_4 = arith.constant 5.000000e-01 : f32
    %25 = vector.broadcast %cst_4 : f32 to vector<16x128xf32>
    %26 = arith.mulf %25, %24 : vector<16x128xf32>
    %cst_5 = arith.constant 5.000000e-01 : f32
    %27 = vector.broadcast %cst_5 : f32 to vector<16x128xf32>
    %28 = arith.addf %26, %27 : vector<16x128xf32>
    %cst_6 = arith.constant 5.000000e-01 : f32
    %29 = vector.broadcast %cst_6 : f32 to vector<16x128xf32>
    %30 = arith.mulf %29, %21 : vector<16x128xf32>
    %31 = math.tanh %30 : vector<16x128xf32>
    %cst_7 = arith.constant 5.000000e-01 : f32
    %32 = vector.broadcast %cst_7 : f32 to vector<16x128xf32>
    %33 = arith.mulf %32, %31 : vector<16x128xf32>
    %cst_8 = arith.constant 5.000000e-01 : f32
    %34 = vector.broadcast %cst_8 : f32 to vector<16x128xf32>
    %35 = arith.addf %33, %34 : vector<16x128xf32>
    %c0_9 = arith.constant 0 : index
    %c0_10 = arith.constant 0 : index
    %c0_11 = arith.constant 0 : index
    %36 = vector.load %arg4[%c0_9, %c0_10, %c0_11] : memref<2x16x128xf32, #tpu.memory_space<vmem>>, vector<1x16x128xf32>
    %37 = vector.shape_cast %36 : vector<1x16x128xf32> to vector<16x128xf32>
    %38 = arith.subf %28, %37 : vector<16x128xf32>
    %c0_12 = arith.constant 0 : index
    %c0_13 = arith.constant 0 : index
    %c0_14 = arith.constant 0 : index
    %39 = vector.load %arg5[%c0_12, %c0_13, %c0_14] : memref<2x16x128xf32, #tpu.memory_space<vmem>>, vector<1x16x128xf32>
    %40 = vector.shape_cast %39 : vector<1x16x128xf32> to vector<16x128xf32>
    %41 = vector.shape_cast %38 : vector<16x128xf32> to vector<1x16x128xf32>
    tpu.vector_store %arg5[%c0_12, %c0_13, %c0_14], %41 {strides = array<i32>} : memref<2x16x128xf32, #tpu.memory_space<vmem>>, vector<1x16x128xf32>,
    %c1_15 = arith.constant 1 : index
    %c0_16 = arith.constant 0 : index
    %c0_17 = arith.constant 0 : index
    %42 = vector.load %arg4[%c1_15, %c0_16, %c0_17] : memref<2x16x128xf32, #tpu.memory_space<vmem>>, vector<1x16x128xf32>
    %43 = vector.shape_cast %42 : vector<1x16x128xf32> to vector<16x128xf32>
    %44 = arith.subf %35, %43 : vector<16x128xf32>
    %c1_18 = arith.constant 1 : index
    %c0_19 = arith.constant 0 : index
    %c0_20 = arith.constant 0 : index
    %45 = vector.load %arg5[%c1_18, %c0_19, %c0_20] : memref<2x16x128xf32, #tpu.memory_space<vmem>>, vector<1x16x128xf32>
    %46 = vector.shape_cast %45 : vector<1x16x128xf32> to vector<16x128xf32>
    %47 = vector.shape_cast %44 : vector<16x128xf32> to vector<1x16x128xf32>
    tpu.vector_store %arg5[%c1_18, %c0_19, %c0_20], %47 {strides = array<i32>} : memref<2x16x128xf32, #tpu.memory_space<vmem>>, vector<1x16x128xf32>,
    return
  }
  func.func @transform_0(%arg0: i32) -> i32 {
    %c0_i32 = arith.constant 0 : i32
    %c0_i32_0 = arith.constant 0 : i32
    return %c0_i32 : i32
  }
  func.func @transform_1(%arg0: i32) -> i32 {
    %c0_i32 = arith.constant 0 : i32
    %c0_i32_0 = arith.constant 0 : i32
    return %c0_i32 : i32
  }
  func.func @transform_2(%arg0: i32) -> (i32, i32) {
    %c0_i32 = arith.constant 0 : i32
    %c0_i32_0 = arith.constant 0 : i32
    return %c0_i32, %arg0 : i32, i32
  }
  func.func @transform_3(%arg0: i32) -> (i32, i32, i32) {
    %c0_i32 = arith.constant 0 : i32
    %c0_i32_0 = arith.constant 0 : i32
    %c0_i32_1 = arith.constant 0 : i32
    return %c0_i32, %c0_i32_0, %arg0 : i32, i32, i32
  }
  func.func @transform_4(%arg0: i32) -> (i32, i32, i32) {
    %c0_i32 = arith.constant 0 : i32
    %c0_i32_0 = arith.constant 0 : i32
    %c0_i32_1 = arith.constant 0 : i32
    return %c0_i32, %c0_i32_0, %arg0 : i32, i32, i32
  }
}

</mosaic_0001>

<bundles_post_ra>
// kernel: tpu_custom_call.1
= control target key start
LH: loop header
LB: loop body
LE: loop exit
PB: predicated region body
PF: predicated region fallthrough
CT: control target
= control target key end

     0   :  { %10 = vsyncpa [#allocation6], 0  ;;  %s327_s0 = inlined_call_operand.vmem [shape: f32[3], index: 0, kind: input, shape index: {}]   ;;  %s328_s1 = inlined_call_operand.<no memory space> [shape: f32[1], index: 1, kind: input, shape index: {}]   ;;  %s329_s2 = inlined_call_operand.hbm [shape: f32[16,128], index: 2, kind: input, shape index: {}]   ;;  %s330_s3 = inlined_call_operand.hbm [shape: f32[2,16,128], index: 3, kind: input, shape index: {}]   ;;  %s331_s4 = inlined_call_operand.hbm [shape: f32[2,16,128], index: 4, kind: output, shape index: {}]  }
   0x1   :  { %11 = vsyncpa [#allocation4], 0 }
   0x2   :  { %12 = vsyncpa [#allocation9], 0 }
   0x3   :  { %13 = vsyncpa [#allocation5], 0  ;;  %s20_s17 = sshll.u32 %s327_s0, 4  ;;  %s21_s17 = int_to_ptr.vmem [resolvable:$true] %s20_s17 }
   0x4   :  { %s159_s18 = scalar_lea.vmem %s21_s17, 16  ;;  %p164_p1 = scmp.lt.s32.totalorder %s21_s17, %s21_s17 }
   0x5   :  { %p160_p0 = scmp.ne.s32.totalorder %s21_s17, %s159_s18  ;;  %p165_p2 = scmp.lt.s32.totalorder %s159_s18, %s159_s18 }
   0x7   :  { %p166_p3 = por %p165_p2, %p164_p1 }
   0x9   :  { %p167_p4 = pnand %p166_p3, %p160_p0 }
   0xb   :  { %170 = shalt.err (!%p167_p4)
}
   0xc   :  { %s245_s19 = smov [#allocation3]   ;;  %s246_s20 = smov [#allocation7]  }
   0xd   :  { %23 = dma.vmem_to_smem %s21_s17, 16, %s245_s19, [#allocation6]  }
   0xe   :  { %s31_s21 = sshll.u32 %s246_s20, 4  ;;  %s171_s24 = scalar_lea.hbm %s329_s2, 256  ;;  %s32_s21 = int_to_ptr.vmem [resolvable:$true] %s31_s21 }
   0xf   :  { %p172_p5 = scmp.ne.s32.totalorder %s329_s2, %s171_s24  ;;  %p175_p6 = scmp.lt.u32.totalorder %s171_s24, %s329_s2 }
  0x11   :  { %p177_p7 = pnand %p175_p6, %p172_p5 }
  0x13   :  { %180 = shalt.err (!%p177_p7)
}
  0x14   :  { %s181_s28 = scalar_lea.vmem %s32_s21, 256  ;;  %p186_p9 = scmp.lt.s32.totalorder %s32_s21, %s32_s21 }
  0x15   :  { %p182_p8 = scmp.ne.s32.totalorder %s32_s21, %s181_s28  ;;  %p187_p10 = scmp.lt.s32.totalorder %s181_s28, %s181_s28 }
  0x17   :  { %p188_p11 = por %p187_p10, %p186_p9 }
  0x19   :  { %p189_p12 = pnand %p188_p11, %p182_p8 }
  0x1b   :  { %192 = shalt.err (!%p189_p12)
}
  0x1c   :  { %s247_s29 = smov 128   ;;  %s248_s30 = smov 8  }
  0x1d   :  { %37 = dma.hbm_to_vmem [thread:$0]  %s329_s2, 256, %s32_s21, [#allocation4], %s247_s29, %s247_s29, %s248_s30  }
  0x1e   :  { %s249_s7 = smov [#allocation8]   ;;  %s193_s11 = scalar_lea.hbm %s330_s3, 512 }
  0x1f   :  { %s43_s8 = sshll.u32 %s249_s7, 4  ;;  %p194_p13 = scmp.ne.s32.totalorder %s330_s3, %s193_s11  ;;  %s44_s8 = int_to_ptr.vmem [resolvable:$true] %s43_s8 }
  0x20   :  { %p197_p0 = scmp.lt.u32.totalorder %s193_s11, %s330_s3 }
  0x22   :  { %p199_p1 = pnand %p197_p0, %p194_p13 }
  0x24   :  { %202 = shalt.err (!%p199_p1)
}
  0x25   :  { %s203_s16 = scalar_lea.vmem %s44_s8, 512  ;;  %p208_p3 = scmp.lt.s32.totalorder %s44_s8, %s44_s8 }
  0x26   :  { %p204_p2 = scmp.ne.s32.totalorder %s44_s8, %s203_s16  ;;  %p209_p4 = scmp.lt.s32.totalorder %s203_s16, %s203_s16 }
  0x28   :  { %p210_p5 = por %p209_p4, %p208_p3 }
  0x2a   :  { %p211_p6 = pnand %p210_p5, %p204_p2 }
  0x2c   :  { %214 = shalt.err (!%p211_p6)
}
  0x2d   :  { %49 = dma.hbm_to_vmem [thread:$0]  %s330_s3, 512, %s44_s8, [#allocation9], %s247_s29, %s247_s29, %s248_s30  }
  0x2e   :  { %237 = dma.done.wait [#allocation6], 16  }
  0x2f   :  { %238 = vsyncadd [#allocation6], 4294967280 }
  0x30   :  { %239 = dma.done.wait [#allocation4], 256  }
  0x31   :  { %240 = vsyncadd [#allocation4], 4294967040 }
  0x32   :  { %241 = dma.done.wait [#allocation9], 512  }
  0x33   :  { %242 = vsyncadd [#allocation9], 4294966784 }
  0x34   :  { %59 = sfence }
  0x35   :  { %s143_s18 = sld [smem:[#allocation3 + $0x1]]  ;;  %v64_v0 = vld [vmem:[#allocation7] sm:$0xff]  ;;  %v65_v1 = vld [vmem:[#allocation7 + $0x8] sm:$0xff]  ;;  %v68_v2 = vlaneseq  ;;  %s60_s19 = sld [smem:[#allocation3]]  ;;  %v81_v10 = vstv %s328_s1  ;;  %v110_v33 = vld [vmem:[#allocation8] sm:$0xff] }
  0x36   :  { %v66_v3 = vrot.slane %v64_v0, 1  ;;  %v67_v4 = vrot.slane %v65_v1, 1  ;;  %s144_s20 = sld [smem:[#allocation3 + $0x2]]  ;;  %v111_v36 = vld [vmem:[#allocation8 + $0x8] sm:$0xff]  ;;  %v117_v43 = vld [vmem:[#allocation8 + $0x10] sm:$0xff]  ;;  %v118_v46 = vld [vmem:[#allocation8 + $0x18] sm:$0xff] }
  0x37   :  { %v69_v5 = vshrl.u32 %v68_v2, 7  ;;  %s250_s1 = smov [#allocation10]  }
  0x38   :  { %s129_s22 = sshll.u32 %s250_s1, 4  ;;  %s130_s22 = int_to_ptr.vmem [resolvable:$true] %s129_s22 }
  0x39   :  { %vm70_vm0 = vcmp.lt.s32.totalorder %v69_v5, 7  ;;  %v73_v6 = vadd.s32 8, %v69_v5  ;;  %s215_s23 = scalar_lea.vmem %s130_s22, 512  ;;  %p220_p8 = scmp.lt.s32.totalorder %s130_s22, %s130_s22 }
  0x3a   :  { %v71_v7 = vsel %vm70_vm0, %v66_v3, %v67_v4  ;;  %v72_v8 = vsel %vm70_vm0, %v67_v4, %v66_v3  ;;  %p216_p7 = scmp.ne.s32.totalorder %s130_s22, %s215_s23  ;;  %p221_p9 = scmp.lt.s32.totalorder %s215_s23, %s215_s23 }
  0x3b   :  { %v78_v9 = vstv %s143_s18  ;;  %vm75_vm1 = vcmp.lt.s32.totalorder %v73_v6, 9  ;;  %v87_v13 = vstv %s60_s19 }
  0x3c   :  { %v79_v11 = vmul.f32 %v78_v9, %v64_v0  ;;  %v80_v12 = vmul.f32 %v78_v9, %v65_v1  ;;  %v77_v14 = vsel %vm75_vm1, %v72_v8, 0.0  ;;  %v84_v15 = vstv %s144_s20  ;;  %p222_p10 = por %p221_p9, %p220_p8 }
  0x3d   :  { %v88_v16 = vmul.f32 %v87_v13, %v71_v7  ;;  %v89_v17 = vmul.f32 %v87_v13, %v77_v14  ;;  %v85_v20 = vmul.f32 %v84_v15, %v64_v0  ;;  %v86_v21 = vmul.f32 %v84_v15, %v65_v1 }
  0x3e   :  { %v82_v18 = vadd.f32 %v81_v10, %v79_v11  ;;  %v83_v19 = vadd.f32 %v81_v10, %v80_v12  ;;  %p223_p11 = pnand %p222_p10, %p216_p7 }
  0x3f   :  { %v90_v24 = vadd.f32 %v88_v16, %v85_v20  ;;  %v91_v25 = vadd.f32 %v89_v17, %v86_v21 }
  0x40   :  { %v94_v22 = vmul.f32 0.5, %v82_v18  ;;  %v95_v23 = vmul.f32 0.5, %v83_v19 }
  0x41   :  { %v92_v26 = vadd.f32 %v90_v24, %v81_v10  ;;  %v93_v27 = vadd.f32 %v91_v25, %v81_v10 }
  0x42   :  { %151 = vtanh.f32 %v94_v22 }
  0x43   :  { %153 = vtanh.f32 %v95_v23  ;;  %v102_v28 = vmul.f32 0.5, %v92_v26  ;;  %v103_v29 = vmul.f32 0.5, %v93_v27 }
  0x45   :  { %155 = vtanh.f32 %v102_v28 }
  0x46   :  { %157 = vtanh.f32 %v103_v29 }
  0x4c   :  { %v152_v30 = vpop.eup %151 }
  0x4d   :  { %v154_v31 = vpop.eup %153  ;;  %v98_v32 = vmul.f32 0.5, %v152_v30 }
  0x4e   :  { %v99_v34 = vmul.f32 0.5, %v154_v31 }
  0x4f   :  { %v100_v35 = vadd.f32 0.5, %v98_v32  ;;  %v156_v37 = vpop.eup %155 }
  0x50   :  { %v101_v38 = vadd.f32 0.5, %v99_v34  ;;  %v158_v39 = vpop.eup %157  ;;  %v106_v41 = vmul.f32 0.5, %v156_v37 }
  0x51   :  { %v112_v40 = vsub.f32 %v100_v35, %v110_v33  ;;  %v107_v44 = vmul.f32 0.5, %v158_v39 }
  0x52   :  { %v113_v42 = vsub.f32 %v101_v38, %v111_v36  ;;  %v108_v45 = vadd.f32 0.5, %v106_v41 }
  0x53   :  { %114 = vst [vmem:[#allocation10] sm:$0xff] %v112_v40  ;;  %v109_v47 = vadd.f32 0.5, %v107_v44 }
  0x54   :  { %115 = vst [vmem:[#allocation10 + $0x8] sm:$0xff] %v113_v42  ;;  %v119_v48 = vsub.f32 %v108_v45, %v117_v43 }
  0x55   :  { %v120_v49 = vsub.f32 %v109_v47, %v118_v46 }
  0x56   :  { %122 = vst [vmem:[#allocation10 + $0x10] sm:$0xff] %v119_v48 }
  0x57   :  { %123 = vst [vmem:[#allocation10 + $0x18] sm:$0xff] %v120_v49 }
  0x58   :  { %226 = shalt.err (!%p223_p11)
}
  0x59   :  { %s227_s26 = scalar_lea.hbm %s331_s4, 512 }
  0x5a   :  { %p228_p12 = scmp.ne.s32.totalorder %s331_s4, %s227_s26  ;;  %p231_p13 = scmp.lt.u32.totalorder %s227_s26, %s331_s4 }
  0x5c   :  { %p233_p0 = pnand %p231_p13, %p228_p12 }
  0x5e   :  { %236 = shalt.err (!%p233_p0)
}
  0x5f   :  { %135 = dma.vmem_to_hbm [thread:$0]  %s130_s22, 512, %s331_s4, [#allocation5], %s247_s29, %s247_s29, %s248_s30  }
  0x60   :  { %243 = dma.done.wait [#allocation5], 512  }
  0x61   :  { %244 = vsyncadd [#allocation5], 4294966784 }
  0x62   :  { %139 = vsyncpa [#allocation4], 1 }
  0x63   :  { %140 = vsyncpa [#allocation9], 1 }
  0x64   :  { %141 = vsyncpa [#allocation5], 1 }
  0x65   :  { %142 = vsyncpa [#allocation6], 1 }

</bundles_post_ra>
